<compile_context>
chip_gen: v5e
topology: v5e:2x2
jax: 0.10.0
libtpu: 0.0.40
codegen_flags: <defaults>
</compile_context>

<pallas_src>
import math
import functools

import jax
import jax.numpy as jnp
import numpy as np
from jax.experimental import pallas as pl
from jax.experimental.pallas import tpu as pltpu


# ----------------------------------------------------------------------------------
# Hardware-aware defaults
# ----------------------------------------------------------------------------------
def _vmem_capacity_bytes() -> int:
    """Physical VMEM per TensorCore; falls back to 128 MiB if the query is unavailable."""
    try:
        return int(pltpu.get_tpu_info().vmem_capacity_bytes)
    except Exception:  # query not available on this runtime -> conservative default
        return 128 * 1024 * 1024


def _pick_tile(n: int, target: int, multiple: int) -> int:
    """Largest tile <= target that divides n and is a multiple of `multiple`, else full n."""
    if n <= target:
        return n
    for t in range(min(target, n), 0, -1):
        if n % t == 0 and t % multiple == 0:
            return t
    return n


def _pick_head_chunk(n_head: int, tq: int, tk: int, budget_bytes: int) -> int:
    """Largest divisor of n_head whose f32 score/probability temporaries fit the budget."""
    per_head = tq * tk * 12  # s (f32) + p (f32) + p cast, roughly
    best = 1
    for c in range(1, n_head + 1):
        if n_head % c == 0 and c * per_head <= budget_bytes:
            best = c
    return best


# ----------------------------------------------------------------------------------
# Stage 1: fused K/V projection (runs once over the kv sequence)
# ----------------------------------------------------------------------------------
def _kv_proj_kernel(kvx_ref, wkv_ref, bkv_ref, kT_ref, vT_ref, *,
                    n_head: int, d_head: int, compute_dtype):
    """One full-width (TKp, D) @ (D, 2D) matmul; write per-head transposed (dh, TKp)
    K/V slabs so the flash kernel gets lane-dense blocks and a transpose-free hot loop."""
    D = n_head * d_head
    kv = jnp.dot(kvx_ref[...], wkv_ref[...], preferred_element_type=jnp.float32)
    kv = kv + bkv_ref[...]                                          # (TKp, 2D) f32
    for h in range(n_head):                                         # amortized: once per kv tile
        kT_ref[h] = kv[:, h * d_head:(h + 1) * d_head].T.astype(compute_dtype)
        vT_ref[h] = kv[:, D + h * d_head:D + (h + 1) * d_head].T.astype(compute_dtype)


# ----------------------------------------------------------------------------------
# Stage 2: flash attention (fused Q projection + online softmax + output projection)
# ----------------------------------------------------------------------------------
def _flash_attn_kernel(qx_ref, kT_ref, vT_ref, wq_ref, bq_ref, wo_ref, bo_ref,
                       o_ref,
                       q_scr, m_scr, l_scr, acc_scr, ho_scr, *,
                       n_head: int, d_head: int, head_chunk: int,
                       compute_dtype, exp_dtype):
    ki = pl.program_id(2)
    nk = pl.num_programs(2)
    H, dh, HC = n_head, d_head, head_chunk
    cdt = compute_dtype
    f32_compute = np.dtype(cdt) == np.dtype(np.float32)
    exp_is_f32 = np.dtype(exp_dtype) == np.dtype(np.float32)

    # ---- once per (batch, q-tile): init stats + full-width Q projection ----
    @pl.when(ki == 0)
    def _():
        m_scr[...] = jnp.full(m_scr.shape, -jnp.inf, dtype=jnp.float32)
        l_scr[...] = jnp.zeros(l_scr.shape, dtype=jnp.float32)
        acc_scr[...] = jnp.zeros(acc_scr.shape, dtype=jnp.float32)
        qf = jnp.dot(qx_ref[...], wq_ref[...], preferred_element_type=jnp.float32)
        qf = (qf + bq_ref[...]).astype(cdt)                         # (TQ, D); scaling pre-folded
        for h in range(H):                                          # static lane slices -> head-major scratch
            q_scr[h] = qf[:, h * dh:(h + 1) * dh]

    # ---- flash (online softmax) update for this kv tile, chunked over heads ----
    def flash_chunk(hs):
        q_c = q_scr[hs]                                             # (HC, TQ, dh)
        kT_c = kT_ref[hs]                                           # (HC, dh, TK) lane-dense
        s = jnp.einsum('hqd,hdk->hqk', q_c, kT_c,
                       preferred_element_type=jnp.float32)          # (HC, TQ, TK) f32
        m_prev = m_scr[hs]
        m_new = jnp.maximum(m_prev, jnp.max(s, axis=-1, keepdims=True))
        alpha = jnp.exp(m_prev - m_new)                             # f32 running stats
        x = s - m_new
        if not exp_is_f32:
            x = x.astype(exp_dtype)                                 # optional bf16 exp (v6e/v7x EUP)
        p = jnp.exp(x)
        p_sum = jnp.sum(p, axis=-1, keepdims=True)
        if not exp_is_f32:
            p_sum = p_sum.astype(jnp.float32)
        l_scr[hs] = alpha * l_scr[hs] + p_sum
        acc_scr[hs] = alpha * acc_scr[hs] + jnp.einsum(
            'hqk,hdk->hqd', p.astype(cdt), vT_ref[hs],
            preferred_element_type=jnp.float32)
        m_scr[hs] = m_new

    n_chunks = H // HC
    if n_chunks == 1:
        flash_chunk(pl.ds(0, H))
    else:
        def body(c, carry):
            flash_chunk(pl.ds(c * HC, HC))
            return carry
        jax.lax.fori_loop(0, n_chunks, body, 0)

    # ---- finalize: normalize, merge heads lane-wise, single full-depth O projection ----
    @pl.when(ki == nk - 1)
    def _():
        l = l_scr[...]
        inv_l = (1.0 / l) if f32_compute else pl.reciprocal(l, approx=True)
        for h in range(H):                                          # static lane-slice stores
            ho_scr[:, h * dh:(h + 1) * dh] = (acc_scr[h] * inv_l[h]).astype(cdt)
        out = jnp.dot(ho_scr[...], wo_ref[...], preferred_element_type=jnp.float32)
        o_ref[...] = (out + bo_ref[...]).astype(o_ref.dtype)


# ----------------------------------------------------------------------------------
# One-time parameter preparation (keep the result; reuse it across forward calls)
# ----------------------------------------------------------------------------------
def prepare_mha_params(params, n_head: int, qk_scale: float = 1.0,
                       compute_dtype=jnp.float32):
    wq, bq, wk, wv, bv, wo, bo = params
    D = wq.shape[0]
    assert D % n_head == 0
    dh = D // n_head
    q_mult = math.sqrt(qk_scale) / math.sqrt(dh)      # sqrt(qk_scale) on q + 1/sqrt(dh) from SDPA
    k_mult = math.sqrt(qk_scale)                      # sqrt(qk_scale) on k (matches ref. ranges)
    wq_t = (wq.T * q_mult).astype(compute_dtype)                                     # (D, D)
    bq_r = (bq * q_mult).reshape(1, D).astype(jnp.float32)
    wkv_t = jnp.concatenate([wk.T * k_mult, wv.T], axis=1).astype(compute_dtype)     # (D, 2D)
    bkv_r = jnp.concatenate([jnp.zeros((D,), jnp.float32),
                             bv.astype(jnp.float32)]).reshape(1, 2 * D)
    wo_t = wo.T.astype(compute_dtype)                                                # (D, D)
    bo_r = bo.reshape(1, D).astype(jnp.float32)
    return dict(n_head=n_head, d_head=dh, compute_dtype=compute_dtype,
                wq_t=wq_t, bq=bq_r, wkv_t=wkv_t, bkv=bkv_r, wo_t=wo_t, bo=bo_r)


# ----------------------------------------------------------------------------------
# Forward
# ----------------------------------------------------------------------------------
def multi_head_attention(qx, kvx, prep, *, q_tile=None, kv_tile=None,
                         kv_proj_tile=None, head_chunk=None, softmax_exp_dtype=None):
    """qx: (B, Tq, D), kvx: (B, Tk, D) -> (B, Tq, D). Default MultiHeadAttention path."""
    H, dh, cdt = prep["n_head"], prep["d_head"], prep["compute_dtype"]
    B, Tq, D = qx.shape
    Bk, Tk, Dk = kvx.shape
    assert B == Bk and D == Dk == H * dh
    out_dtype = qx.dtype

    cap = _vmem_capacity_bytes()
    small_vmem = cap <= 80 * 1024 * 1024               # v7x-class (64 MiB / TensorCore)
    vmem_limit = (cap // 8) * 7                        # headroom for compiler-internal scratch
    if q_tile is None:
        q_tile = 256
    if kv_tile is None:
        kv_tile = 256 if small_vmem else 512
    if kv_proj_tile is None:
        kv_proj_tile = 512

    TQ = _pick_tile(Tq, q_tile, 8)
    TK = _pick_tile(Tk, kv_tile, 128)                  # lane dim of the kT/vT blocks
    TKP = _pick_tile(Tk, kv_proj_tile, 128)
    if head_chunk is None:
        budget = (4 if small_vmem else 8) * 1024 * 1024
        head_chunk = _pick_head_chunk(H, TQ, TK, budget)
    assert H % head_chunk == 0
    exp_dtype = jnp.float32 if softmax_exp_dtype is None else softmax_exp_dtype

    qx_c = qx.astype(cdt)                              # cast once in the wrapper (halves DMA for bf16)
    kvx_c = kvx.astype(cdt)

    # ---- stage 1: fused K/V projection -> (B, H, dh, Tk) transposed head slabs ----
    kT, vT = pl.pallas_call(
        functools.partial(_kv_proj_kernel, n_head=H, d_head=dh, compute_dtype=cdt),
        out_shape=(jax.ShapeDtypeStruct((B, H, dh, Tk), cdt),
                   jax.ShapeDtypeStruct((B, H, dh, Tk), cdt)),
        grid_spec=pltpu.PrefetchScalarGridSpec(
            num_scalar_prefetch=0,
            grid=(B, Tk // TKP),
            in_specs=[
                pl.BlockSpec((None, TKP, D), lambda b, ki: (b, ki, 0)),
                pl.BlockSpec((D, 2 * D), lambda b, ki: (0, 0)),
                pl.BlockSpec((1, 2 * D), lambda b, ki: (0, 0)),
            ],
            out_specs=[
                pl.BlockSpec((None, H, dh, TKP), lambda b, ki: (b, 0, 0, ki)),
                pl.BlockSpec((None, H, dh, TKP), lambda b, ki: (b, 0, 0, ki)),
            ],
        ),
        compiler_params=pltpu.CompilerParams(
            dimension_semantics=("parallel", "parallel"),
            vmem_limit_bytes=vmem_limit),
    )(kvx_c, prep["wkv_t"], prep["bkv"])

    # ---- stage 2: flash attention over (batch, q tiles, kv tiles) ----
    kernel = functools.partial(
        _flash_attn_kernel, n_head=H, d_head=dh, head_chunk=head_chunk,
        compute_dtype=cdt, exp_dtype=exp_dtype)
    out = pl.pallas_call(
        kernel,
        out_shape=jax.ShapeDtypeStruct((B, Tq, D), out_dtype),
        grid_spec=pltpu.PrefetchScalarGridSpec(
            num_scalar_prefetch=0,
            grid=(B, Tq // TQ, Tk // TK),
            in_specs=[
                pl.BlockSpec((None, TQ, D), lambda b, qi, ki: (b, qi, 0)),       # qx tile
                pl.BlockSpec((None, H, dh, TK), lambda b, qi, ki: (b, 0, 0, ki)),  # K^T slab
                pl.BlockSpec((None, H, dh, TK), lambda b, qi, ki: (b, 0, 0, ki)),  # V^T slab
                pl.BlockSpec((D, D), lambda b, qi, ki: (0, 0)),                  # Wq^T (pre-scaled)
                pl.BlockSpec((1, D), lambda b, qi, ki: (0, 0)),                  # bq (pre-scaled)
                pl.BlockSpec((D, D), lambda b, qi, ki: (0, 0)),                  # Wo^T
                pl.BlockSpec((1, D), lambda b, qi, ki: (0, 0)),                  # bo
            ],
            out_specs=pl.BlockSpec((None, TQ, D), lambda b, qi, ki: (b, qi, 0)),
            scratch_shapes=[
                pltpu.VMEM((H, TQ, dh), cdt),           # projected q (head-major)
                pltpu.VMEM((H, TQ, 1), jnp.float32),    # running max
                pltpu.VMEM((H, TQ, 1), jnp.float32),    # running sum
                pltpu.VMEM((H, TQ, dh), jnp.float32),   # output accumulator
                pltpu.VMEM((TQ, D), cdt),               # merged heads before O projection
            ],
        ),
        compiler_params=pltpu.CompilerParams(
            dimension_semantics=("parallel", "parallel", "arbitrary"),
            vmem_limit_bytes=vmem_limit),
    )(qx_c, kT, vT, prep["wq_t"], prep["bq"], prep["wo_t"], prep["bo"])
    return out


# ----------------------------------------------------------------------------------
# Plain-JAX reference mirroring the PyTorch forward (default path)
# ----------------------------------------------------------------------------------
def _reference(qx, kvx, params, *, n_head, qk_scale=1.0):
    wq, bq, wk, wv, bv, wo, bo = params
    s = math.sqrt(qk_scale)
    B, Tq, D = qx.shape
    Tk = kvx.shape[1]
    dh = D // n_head

    q = (qx @ wq.T + bq) * s
    k = (kvx @ wk.T) * s
    v = kvx @ wv.T + bv

    def split(x, T):
        return x.reshape(B, T, n_head, dh).transpose(0, 2, 1, 3)

    qh, kh, vh = split(q, Tq), split(k, Tk), split(v, Tk)
    att = jnp.einsum('bhqd,bhkd->bhqk', qh, kh) / math.sqrt(dh)
    p = jax.nn.softmax(att, axis=-1)
    o = jnp.einsum('bhqk,bhkd->bhqd', p, vh)
    o = o.transpose(0, 2, 1, 3).reshape(B, Tq, D)
    return o @ wo.T + bo


if __name__ == "__main__":
    def make_params(key, D):
        ks = jax.random.split(key, 7)
        sc = 1.0 / math.sqrt(D)
        wq = jax.random.normal(ks[0], (D, D), jnp.float32) * sc
        bq = jax.random.normal(ks[1], (D,), jnp.float32) * 0.1
        wk = jax.random.normal(ks[2], (D, D), jnp.float32) * sc
        wv = jax.random.normal(ks[3], (D, D), jnp.float32) * sc
        bv = jax.random.normal(ks[4], (D,), jnp.float32) * 0.1
        wo = jax.random.normal(ks[5], (D, D), jnp.float32) * sc
        bo = jax.random.normal(ks[6], (D,), jnp.float32) * 0.1
        return (wq, bq, wk, wv, bv, wo, bo)

    key = jax.random.PRNGKey(0)
    k1, k2, k3 = jax.random.split(key, 3)

    # --- test 1: small module-default shapes, f32 compute, single tile, unchunked heads ---
    B, Tq, Tk, D, H = 2, 8, 8, 32, 4
    params = make_params(k1, D)
    qx = jax.random.normal(k2, (B, Tq, D), jnp.float32)
    kvx = jax.random.normal(k3, (B, Tk, D), jnp.float32)
    prep = prepare_mha_params(params, n_head=H, qk_scale=1.0, compute_dtype=jnp.float32)
    out = jax.block_until_ready(multi_head_attention(qx, kvx, prep))
    ref = _reference(qx, kvx, params, n_head=H, qk_scale=1.0)
    np.testing.assert_allclose(np.asarray(out), np.asarray(ref), rtol=2e-3, atol=2e-3)

    # --- test 2: multi-tile flash path, bf16 MXU operands, head-chunked (fori) update ---
    k4, k5, k6 = jax.random.split(k3, 3)
    B2, Tq2, Tk2, D2, H2 = 2, 128, 256, 128, 4
    params2 = make_params(k4, D2)
    qx2 = jax.random.normal(k5, (B2, Tq2, D2), jnp.float32)
    kvx2 = jax.random.normal(k6, (B2, Tk2, D2), jnp.float32)
    prep2 = prepare_mha_params(params2, n_head=H2, qk_scale=0.5, compute_dtype=jnp.bfloat16)
    out2 = jax.block_until_ready(multi_head_attention(
        qx2, kvx2, prep2, q_tile=64, kv_tile=128, head_chunk=2))
    ref2 = _reference(qx2, kvx2, params2, n_head=H2, qk_scale=0.5)
    np.testing.assert_allclose(np.asarray(out2), np.asarray(ref2), rtol=5e-2, atol=5e-2)

    print("KERNEL_OK")
</pallas_src>

<mosaic_0001>
module attributes {stable_mosaic.version = 11 : i64} {
  func.func @_kv_proj_kernel(%arg0: i32, %arg1: i32, %arg2: memref<1x8x32xf32, #tpu.memory_space<vmem>>, %arg3: memref<32x64xf32, #tpu.memory_space<vmem>>, %arg4: memref<1x64xf32, #tpu.memory_space<vmem>>, %arg5: memref<1x4x8x8xf32, #tpu.memory_space<vmem>>, %arg6: memref<1x4x8x8xf32, #tpu.memory_space<vmem>>) attributes {dimension_semantics = [#tpu.dimension_semantics<parallel>, #tpu.dimension_semantics<parallel>], iteration_bounds = array<i64: 2, 1>, scalar_prefetch = 0 : i64, scratch_operands = 0 : i64, tpu.core_type = #tpu.core_type<tc>, window_params = [{transform_indices = @transform_0, window_bounds = array<i64: 1, 8, 32>}, {pipeline_mode = #tpu.pipeline_mode<synchronous>, transform_indices = @transform_1, window_bounds = array<i64: 32, 64>}, {pipeline_mode = #tpu.pipeline_mode<synchronous>, transform_indices = @transform_2, window_bounds = array<i64: 1, 64>}, {transform_indices = @transform_3, window_bounds = array<i64: 1, 4, 8, 8>}, {transform_indices = @transform_4, window_bounds = array<i64: 1, 4, 8, 8>}]} {
    %c0 = arith.constant 0 : index
    %c0_0 = arith.constant 0 : index
    %c0_1 = arith.constant 0 : index
    %0 = vector.load %arg2[%c0, %c0_0, %c0_1] : memref<1x8x32xf32, #tpu.memory_space<vmem>>, vector<1x8x32xf32>
    %1 = vector.shape_cast %0 : vector<1x8x32xf32> to vector<8x32xf32>
    %c0_2 = arith.constant 0 : index
    %c0_3 = arith.constant 0 : index
    %2 = vector.load %arg3[%c0_2, %c0_3] : memref<32x64xf32, #tpu.memory_space<vmem>>, vector<32x64xf32>
    %cst = arith.constant dense<0.000000e+00> : vector<8x64xf32>
    %3 = tpu.matmul %1, %2, %cst {dimension_numbers = #tpu.dot_dimension_numbers<[1], [0], [0], [1], [0, 0, 1, 1], [], []>} : vector<8x32xf32>, vector<32x64xf32>, vector<8x64xf32> -> vector<8x64xf32>
    %c0_4 = arith.constant 0 : index
    %c0_5 = arith.constant 0 : index
    %4 = vector.load %arg4[%c0_4, %c0_5] : memref<1x64xf32, #tpu.memory_space<vmem>>, vector<1x64xf32>
    %5 = vector.broadcast %4 : vector<1x64xf32> to vector<8x64xf32>
    %6 = arith.addf %3, %5 : vector<8x64xf32>
    %7 = vector.extract_strided_slice %6 {offsets = [0, 0], sizes = [8, 8], strides = [1, 1]} : vector<8x64xf32> to vector<8x8xf32>
    %8 = tpu.transpose %7, [1, 0] : vector<8x8xf32> -> vector<8x8xf32>
    %c0_6 = arith.constant 0 : index
    %c0_7 = arith.constant 0 : index
    %c0_8 = arith.constant 0 : index
    %c0_9 = arith.constant 0 : index
    %9 = vector.load %arg5[%c0_6, %c0_7, %c0_8, %c0_9] : memref<1x4x8x8xf32, #tpu.memory_space<vmem>>, vector<1x1x8x8xf32>
    %10 = vector.shape_cast %9 : vector<1x1x8x8xf32> to vector<8x8xf32>
    %11 = vector.shape_cast %8 : vector<8x8xf32> to vector<1x1x8x8xf32>
    tpu.vector_store %arg5[%c0_6, %c0_7, %c0_8, %c0_9], %11 {strides = array<i32>} : memref<1x4x8x8xf32, #tpu.memory_space<vmem>>, vector<1x1x8x8xf32>,
    %12 = vector.extract_strided_slice %6 {offsets = [0, 32], sizes = [8, 8], strides = [1, 1]} : vector<8x64xf32> to vector<8x8xf32>
    %13 = tpu.transpose %12, [1, 0] : vector<8x8xf32> -> vector<8x8xf32>
    %c0_10 = arith.constant 0 : index
    %c0_11 = arith.constant 0 : index
    %c0_12 = arith.constant 0 : index
    %c0_13 = arith.constant 0 : index
    %14 = vector.load %arg6[%c0_10, %c0_11, %c0_12, %c0_13] : memref<1x4x8x8xf32, #tpu.memory_space<vmem>>, vector<1x1x8x8xf32>
    %15 = vector.shape_cast %14 : vector<1x1x8x8xf32> to vector<8x8xf32>
    %16 = vector.shape_cast %13 : vector<8x8xf32> to vector<1x1x8x8xf32>
    tpu.vector_store %arg6[%c0_10, %c0_11, %c0_12, %c0_13], %16 {strides = array<i32>} : memref<1x4x8x8xf32, #tpu.memory_space<vmem>>, vector<1x1x8x8xf32>,
    %17 = vector.extract_strided_slice %6 {offsets = [0, 8], sizes = [8, 8], strides = [1, 1]} : vector<8x64xf32> to vector<8x8xf32>
    %18 = tpu.transpose %17, [1, 0] : vector<8x8xf32> -> vector<8x8xf32>
    %c0_14 = arith.constant 0 : index
    %c1 = arith.constant 1 : index
    %c0_15 = arith.constant 0 : index
    %c0_16 = arith.constant 0 : index
    %19 = vector.load %arg5[%c0_14, %c1, %c0_15, %c0_16] : memref<1x4x8x8xf32, #tpu.memory_space<vmem>>, vector<1x1x8x8xf32>
    %20 = vector.shape_cast %19 : vector<1x1x8x8xf32> to vector<8x8xf32>
    %21 = vector.shape_cast %18 : vector<8x8xf32> to vector<1x1x8x8xf32>
    tpu.vector_store %arg5[%c0_14, %c1, %c0_15, %c0_16], %21 {strides = array<i32>} : memref<1x4x8x8xf32, #tpu.memory_space<vmem>>, vector<1x1x8x8xf32>,
    %22 = vector.extract_strided_slice %6 {offsets = [0, 40], sizes = [8, 8], strides = [1, 1]} : vector<8x64xf32> to vector<8x8xf32>
    %23 = tpu.transpose %22, [1, 0] : vector<8x8xf32> -> vector<8x8xf32>
    %c0_17 = arith.constant 0 : index
    %c1_18 = arith.constant 1 : index
    %c0_19 = arith.constant 0 : index
    %c0_20 = arith.constant 0 : index
    %24 = vector.load %arg6[%c0_17, %c1_18, %c0_19, %c0_20] : memref<1x4x8x8xf32, #tpu.memory_space<vmem>>, vector<1x1x8x8xf32>
    %25 = vector.shape_cast %24 : vector<1x1x8x8xf32> to vector<8x8xf32>
    %26 = vector.shape_cast %23 : vector<8x8xf32> to vector<1x1x8x8xf32>
    tpu.vector_store %arg6[%c0_17, %c1_18, %c0_19, %c0_20], %26 {strides = array<i32>} : memref<1x4x8x8xf32, #tpu.memory_space<vmem>>, vector<1x1x8x8xf32>,
    %27 = vector.extract_strided_slice %6 {offsets = [0, 16], sizes = [8, 8], strides = [1, 1]} : vector<8x64xf32> to vector<8x8xf32>
    %28 = tpu.transpose %27, [1, 0] : vector<8x8xf32> -> vector<8x8xf32>
    %c0_21 = arith.constant 0 : index
    %c2 = arith.constant 2 : index
    %c0_22 = arith.constant 0 : index
    %c0_23 = arith.constant 0 : index
    %29 = vector.load %arg5[%c0_21, %c2, %c0_22, %c0_23] : memref<1x4x8x8xf32, #tpu.memory_space<vmem>>, vector<1x1x8x8xf32>
    %30 = vector.shape_cast %29 : vector<1x1x8x8xf32> to vector<8x8xf32>
    %31 = vector.shape_cast %28 : vector<8x8xf32> to vector<1x1x8x8xf32>
    tpu.vector_store %arg5[%c0_21, %c2, %c0_22, %c0_23], %31 {strides = array<i32>} : memref<1x4x8x8xf32, #tpu.memory_space<vmem>>, vector<1x1x8x8xf32>,
    %32 = vector.extract_strided_slice %6 {offsets = [0, 48], sizes = [8, 8], strides = [1, 1]} : vector<8x64xf32> to vector<8x8xf32>
    %33 = tpu.transpose %32, [1, 0] : vector<8x8xf32> -> vector<8x8xf32>
    %c0_24 = arith.constant 0 : index
    %c2_25 = arith.constant 2 : index
    %c0_26 = arith.constant 0 : index
    %c0_27 = arith.constant 0 : index
    %34 = vector.load %arg6[%c0_24, %c2_25, %c0_26, %c0_27] : memref<1x4x8x8xf32, #tpu.memory_space<vmem>>, vector<1x1x8x8xf32>
    %35 = vector.shape_cast %34 : vector<1x1x8x8xf32> to vector<8x8xf32>
    %36 = vector.shape_cast %33 : vector<8x8xf32> to vector<1x1x8x8xf32>
    tpu.vector_store %arg6[%c0_24, %c2_25, %c0_26, %c0_27], %36 {strides = array<i32>} : memref<1x4x8x8xf32, #tpu.memory_space<vmem>>, vector<1x1x8x8xf32>,
    %37 = vector.extract_strided_slice %6 {offsets = [0, 24], sizes = [8, 8], strides = [1, 1]} : vector<8x64xf32> to vector<8x8xf32>
    %38 = tpu.transpose %37, [1, 0] : vector<8x8xf32> -> vector<8x8xf32>
    %c0_28 = arith.constant 0 : index
    %c3 = arith.constant 3 : index
    %c0_29 = arith.constant 0 : index
    %c0_30 = arith.constant 0 : index
    %39 = vector.load %arg5[%c0_28, %c3, %c0_29, %c0_30] : memref<1x4x8x8xf32, #tpu.memory_space<vmem>>, vector<1x1x8x8xf32>
    %40 = vector.shape_cast %39 : vector<1x1x8x8xf32> to vector<8x8xf32>
    %41 = vector.shape_cast %38 : vector<8x8xf32> to vector<1x1x8x8xf32>
    tpu.vector_store %arg5[%c0_28, %c3, %c0_29, %c0_30], %41 {strides = array<i32>} : memref<1x4x8x8xf32, #tpu.memory_space<vmem>>, vector<1x1x8x8xf32>,
    %42 = vector.extract_strided_slice %6 {offsets = [0, 56], sizes = [8, 8], strides = [1, 1]} : vector<8x64xf32> to vector<8x8xf32>
    %43 = tpu.transpose %42, [1, 0] : vector<8x8xf32> -> vector<8x8xf32>
    %c0_31 = arith.constant 0 : index
    %c3_32 = arith.constant 3 : index
    %c0_33 = arith.constant 0 : index
    %c0_34 = arith.constant 0 : index
    %44 = vector.load %arg6[%c0_31, %c3_32, %c0_33, %c0_34] : memref<1x4x8x8xf32, #tpu.memory_space<vmem>>, vector<1x1x8x8xf32>
    %45 = vector.shape_cast %44 : vector<1x1x8x8xf32> to vector<8x8xf32>
    %46 = vector.shape_cast %43 : vector<8x8xf32> to vector<1x1x8x8xf32>
    tpu.vector_store %arg6[%c0_31, %c3_32, %c0_33, %c0_34], %46 {strides = array<i32>} : memref<1x4x8x8xf32, #tpu.memory_space<vmem>>, vector<1x1x8x8xf32>,
    return
  }
  func.func @transform_0(%arg0: i32, %arg1: i32) -> (i32, i32, i32) {
    %c0_i32 = arith.constant 0 : i32
    %c0_i32_0 = arith.constant 0 : i32
    return %arg0, %arg1, %c0_i32 : i32, i32, i32
  }
  func.func @transform_1(%arg0: i32, %arg1: i32) -> (i32, i32) {
    %c0_i32 = arith.constant 0 : i32
    %c0_i32_0 = arith.constant 0 : i32
    %c0_i32_1 = arith.constant 0 : i32
    return %c0_i32, %c0_i32_0 : i32, i32
  }
  func.func @transform_2(%arg0: i32, %arg1: i32) -> (i32, i32) {
    %c0_i32 = arith.constant 0 : i32
    %c0_i32_0 = arith.constant 0 : i32
    %c0_i32_1 = arith.constant 0 : i32
    return %c0_i32, %c0_i32_0 : i32, i32
  }
  func.func @transform_3(%arg0: i32, %arg1: i32) -> (i32, i32, i32, i32) {
    %c0_i32 = arith.constant 0 : i32
    %c0_i32_0 = arith.constant 0 : i32
    %c0_i32_1 = arith.constant 0 : i32
    return %arg0, %c0_i32, %c0_i32_0, %arg1 : i32, i32, i32, i32
  }
  func.func @transform_4(%arg0: i32, %arg1: i32) -> (i32, i32, i32, i32) {
    %c0_i32 = arith.constant 0 : i32
    %c0_i32_0 = arith.constant 0 : i32
    %c0_i32_1 = arith.constant 0 : i32
    return %arg0, %c0_i32, %c0_i32_0, %arg1 : i32, i32, i32, i32
  }
}

</mosaic_0001>

<bundles_post_ra>
// kernel: tpu_custom_call.1
= control target key start
LH: loop header
LB: loop body
LE: loop exit
PB: predicated region body
PF: predicated region fallthrough
CT: control target
= control target key end

     0   :  { %10 = vsyncpa [#allocation3], 0  ;;  %s1277_s0 = inlined_call_operand.hbm [shape: f32[2,8,32], index: 0, kind: input, shape index: {}]   ;;  %s1278_s1 = inlined_call_operand.hbm [shape: f32[32,64], index: 1, kind: input, shape index: {}]   ;;  %s1279_s2 = inlined_call_operand.vmem [shape: f32[1,64], index: 2, kind: input, shape index: {}]   ;;  %s1280_s3 = inlined_call_operand.hbm [shape: f32[2,4,8,8], index: 3, kind: output, shape index: {0}]   ;;  %s1281_s4 = inlined_call_operand.hbm [shape: f32[2,4,8,8], index: 4, kind: output, shape index: {1}]  }
   0x1   :  { %12 = vsyncpa [#allocation3 + $0x1], 0 }
   0x2   :  { %13 = vsyncpa [#allocation6], 0 }
   0x3   :  { %14 = vsyncpa [#allocation4], 0 }
   0x4   :  { %16 = vsyncpa [#allocation4 + $0x1], 0 }
   0x5   :  { %17 = vsyncpa [#allocation9], 0 }
   0x6   :  { %19 = vsyncpa [#allocation9 + $0x1], 0  ;;  %s1094_s15 = smov 0   ;;  %s1096_s16 = smov 0  }
   0x7   :  { %s1098_s17 = smov 0   ;;  %s1100_s18 = smov 0  }
   0x8   :  { %s1102_s19 = smov 0   ;;  %s1104_s20 = smov 0  }
   0x9 LB: > { %s757_s21 = sadd.s32 4294967295, %s1055_s20   ;;  %p759_p0 = scmp.ge.s32.totalorder %s1055_s20, 1  ;;  %s1055_s20 = sphi %s1104_s20, %s25_s20   ;;  %s1051_s19 = sphi %s1102_s19, %s1292_s19   ;;  %s1047_s18 = sphi %s1100_s18, %s1291_s18   ;;  %s1043_s17 = sphi %s1098_s17, %s1290_s17   ;;  %s1039_s16 = sphi %s1096_s16, %s1289_s16   ;;  %s1035_s15 = sphi %s1094_s15, %s1288_s15  }
   0xa   : > { %p1126_p1 = scmp.eq.s32.totalorder %s757_s21, 0  ;;  %p168_p2 = scmp.lt.s32.totalorder %s1055_s20, 3 }
   0xb   : > { %s179_s25 = sshll.u32 %s1278_s1, 4  ;;  %s1057_s27 = smov [#allocation5]   ;;  %s180_s25 = int_to_ptr.hbm [resolvable:$true] %s179_s25 }
   0xc   : > { %p1134_p3 = pnand %p759_p0, %p168_p2  ;;  %s181_s28 = sshll.u32 %s1057_s27, 4  ;;  %s182_s28 = int_to_ptr.vmem [resolvable:$true] %s181_s28 }
   0xd   : > { %p761_p6 = scmp.ge.s32.totalorder %s1055_s20, 2  ;;  %s1058_s29 = smov 128  }
   0xe   : > { %p796_p4 = pneg %p1134_p3  ;;  %s1059_s30 = smov 8  }
   0xf   : > { %s758_s5 = sadd.s32 4294967294, %s1055_s20   ;;  %s37_s6 = sadd.s32 1, %s1051_s19 }
  0x10   : > { %p797_p5 = pnand %p796_p4, %p1126_p1  ;;  %s46_s7 = sadd.s32 1, %s1043_s17 }
  0x11   : > { %p39_p7 = scmp.ge.s32.totalorder %s37_s6, 2  ;;  %p53_p8 = scmp.ne.s32.totalorder %s1043_s17, %s1039_s16 }
  0x12   : > { %799 = dma.hbm_to_vmem [thread:$0]  (!%p797_p5), %s180_s25, 512, %s182_s28, [#allocation6], %s1058_s29, %s1058_s29, %s1059_s30  }
  0x13   : > { %p54_p9 = scmp.eq.s32.totalorder %s1055_s20, 0  ;;  %p59_p10 = scmp.ne.s32.totalorder %s1039_s16, %s1035_s15 }
  0x14   : > { %s1294_s6 = smov (%p39_p7, %s37_s6), 0  ;;  %p127_p13 = scmp.eq.s32.totalorder %s757_s21, 1 }
  0x15   : > { %p1153_p11 = por %p54_p9, %p53_p8  ;;  %p1159_p12 = por %p1126_p1, %p59_p10 }
  0x16   : > { %s41_s10 = ssub.s32 %s1051_s19, %s1294_s6  ;;  %p133_p2 = scmp.eq.s32.totalorder %s758_s5, 1 }
  0x17   : > { %p44_p0 = scmp.eq.s32.totalorder %s41_s10, 0  ;;  %p1165_p4 = por %p127_p13, %p53_p8 }
  0x18   : > { %p812_p5 = scmp.lt.s32.totalorder %s1055_s20, 2  ;;  %p1173_p7 = por %p133_p2, %p59_p10 }
  0x19   : > { %s1171_s12 = scalar_select %p44_p0, %s1043_s17, %s46_s7  }
  0x1a   : > { %s198_s14 = sand.u32 1, %s1043_s17   ;;  %s763_s24 = sshll.u32 %s1051_s19, 3 }
  0x1b   : > { %s762_s23 = sshll.u32 %s198_s14, 3  ;;  %s207_s21 = scalar_lea.hbm %s1277_s0, %s763_s24 }
  0x1c   : > { %s202_s28 = scalar_lea.vmem [#allocation2], %s762_s23  ;;  %s209_s30 = sshll.u32 %s207_s21, 4  ;;  %s210_s30 = int_to_ptr.hbm [resolvable:$true] %s209_s30 }
  0x1d   : > { %s211_s29 = sshll.u32 %s202_s28, 4  ;;  %p801_p8 = pnand %p812_p5, %p1153_p11  ;;  %s212_s29 = int_to_ptr.vmem [resolvable:$true] %s211_s29 }
  0x1e   : > { %s199_s5 = scalar_lea.sflag [#allocation3], %s198_s14  ;;  %220 = sbr.rel (%p1134_p3) target bundleno = 995 (0x3e3), region = 32 }
  0x1f   : > { %803 = dma.hbm_to_vmem [thread:$0]  (!%p801_p8), %s210_s30, 128, %s212_s29, %s199_s5  }
  0x20   : > { %s1187_s7 = sand.u32 (!%p1134_p3), 1, %s1039_s16  }
  0x21   : > { %s765_s10 = sshll.u32 (!%p1134_p3), %s1187_s7, 3  ;;  %s223_s24 = scalar_lea.sflag (!%p1134_p3), [#allocation3], %s1187_s7 }
  0x22   : > { %s226_s23 = scalar_lea.vmem (!%p1134_p3), [#allocation2], %s765_s10 }
  0x23   : > { %1018 = dma.done.wait (%p1159_p12), %s223_s24, 128  }
  0x24   : > { %1020 = vsyncadd (%p1159_p12), %s223_s24, 4294967168 }
  0x25   : > { %1022 = dma.done.wait (%p1126_p1), [#allocation6], 512  }
  0x26   : > { %1024 = vsyncadd (%p1126_p1), [#allocation6], 4294966784  ;;  %v266_v0 = vld [vmem:[#allocation5 + $0x18] sm:$0xff]  ;;  %v265_v1 = vld [vmem:[#allocation5 + $0x10] sm:$0xff]  ;;  %vm271_vm0 = vcmask 261120   ;;  %s1060_s9 = smov 88  }
  0x27   : > { %287 = vmatpush.msra.mxu0 %v266_v0  ;;  %v264_v2 = vld [vmem:[#allocation5 + $0x8] sm:$0xff]  ;;  %v263_v3 = vld [vmem:[#allocation5] sm:$0xff]  ;;  %v262_v4 = vld [vmem:[%s226_s23] sm:$0xff]  ;;  %s1061_s22 = smov 120   ;;  %s1062_s14 = smov 112   ;;  %vm327_vm1 = vcmask 64512  }
  0x28   : > { %v876_v5 = vld [vmem:[%s1279_s2] ss:$0 sm:$0xff]  ;;  %s1063_s25 = smov 80   ;;  %s1064_s27 = smov 96  }
  0x29   : > { %288 = vmatpush.msra.mxu0 %v265_v1  ;;  %s767_s21 = sshll.u32 %s1187_s7, 5  ;;  %s1065_s29 = smov 104  }
  0x2a   : > { %s1203_s28 = scalar_lea.vmem [#allocation7], %s767_s21  ;;  %s1207_s30 = scalar_lea.vmem [#allocation8], %s767_s21 }
  0x2b   : > { %289 = vmatpush.msra.mxu0 %v264_v2  ;;  %s1066_s5 = smov 72   ;;  %s607_s10 = sshll.u32 %s1203_s28, 4  ;;  %s608_s10 = int_to_ptr.vmem [resolvable:$true] %s607_s10 }
  0x2c   : > { %s784_s24 = sshll.u32 %s1047_s18, 5 }
  0x2d   : > { %290 = vmatpush.msra.mxu0 %v263_v3  ;;  %s606_s8 = scalar_lea.hbm %s1280_s3, %s784_s24 }
  0x2e   : > { %769 = vmatmul.msk.f32.vlgmr.msra.gmra.mxu0 %vm271_vm0, %v262_v4 }
  0xab   : > { %v292_v6 = vpop.f32.mrf.mxu0 }
  0xac   : > { %v293_v7 = vadd.f32 %v876_v5, %v292_v6 }
  0xae   : > { %403 = vrot.lane.b32.xlu2 %v293_v7, %s1060_s9  ;;  %366 = vrot.lane.b32.xlu1 %v293_v7, %s1061_s22  ;;  %s609_s9 = sshll.u32 %s606_s8, 4  ;;  %s589_s22 = scalar_lea.sflag [#allocation4], %s1187_s7  ;;  %s610_s9 = int_to_ptr.hbm [resolvable:$true] %s609_s9 }
  0xaf   : > { %295 = vxpose.xlu0.b32.start.end [1/1] (short) (narrow) %v293_v7, 8 }
  0xb6   : > { %440 = vrot.lane.b32.xlu2 %v293_v7, %s1062_s14  ;;  %s951_s14 = sshra.s32 %s610_s9, 4  ;;  %s952_s14 = int_to_ptr.hbm [resolvable:$true] %s951_s14 }
  0xb7   : > { %p958_p10 = scmp.lt.s32.totalorder %s952_s14, %s1280_s3 }
  0xbe   : > { %477 = vrot.lane.b32.xlu2 %v293_v7, %s1063_s25  ;;  %s953_s25 = scalar_lea.hbm %s952_s14, 32 }
  0xbf   : > { %p954_p1 = scmp.ne.s32.totalorder %s952_s14, %s953_s25 }
  0xc1   : > { %p955_p3 = pnand %p954_p1, %p1165_p4 }
  0xc3   : > { %p956_p9 = pneg %p955_p3 }
 0x108   : > { %v404_v8 = vpop.permute.xlu2 %403 }
 0x110   : > { %v441_v9 = vpop.permute.xlu2 %440 }
 0x118   : > { %v478_v11 = vpop.permute.xlu2 %477 }
 0x11d   : > { %330 = vrot.lane.b32.xlu0 %v293_v7, %s1064_s27 }
 0x120   : > { %v367_v10 = vpop.permute.xlu1 %366 }
 0x121   : > { %369 = vxpose.xlu2.b32.start.end [1/1] (short) (narrow) %v367_v10, 8 }
 0x129   : > { %480 = vxpose.xlu2.b32.start.end [1/1] (short) (narrow) %v478_v11, 8 }
 0x13f   : > { %443 = vxpose.xlu0.b32.start.end [1/1] (short) (narrow) %v441_v9, 8 }
 0x153   : > { %v311_v12 = vpop.trf.xlu0 }
 0x154   : > { %328 = vst.msk [vmem:[%s1203_s28] sm:$0xff] %vm327_vm1, %v311_v12 }
 0x18f   : > { %v331_v13 = vpop.permute.xlu0 %330 }
 0x190   : > { %333 = vxpose.xlu1.b32.start.end [1/1] (short) (narrow) %v331_v13, 8 }
 0x198   : > { %406 = vxpose.xlu1.b32.start.end [1/1] (short) (narrow) %v404_v8, 8 }
 0x1ba   : > { %v385_v19 = vpop.trf.xlu2 }
 0x1bb   : > { %770 = vst.msk [vmem:[%s1203_s28 + $0x8] sm:$0xff] %vm327_vm1, %v385_v19 }
 0x1c2   : > { %v496_v20 = vpop.trf.xlu2 }
 0x1c3   : > { %773 = vst.msk [vmem:[%s1207_s30 + $0x10] sm:$0xff] %vm327_vm1, %v496_v20 }
 0x1e3   : > { %v459_v17 = vpop.trf.xlu0 }
 0x1e4   : > { %772 = vst.msk [vmem:[%s1203_s28 + $0x10] sm:$0xff] %vm327_vm1, %v459_v17 }
 0x1f2   : > { %514 = vrot.lane.b32.xlu1 %v293_v7, %s1065_s29 }
 0x234   : > { %v349_v14 = vpop.trf.xlu1 }
 0x235   : > { %365 = vst.msk [vmem:[%s1207_s30] sm:$0xff] %vm327_vm1, %v349_v14 }
 0x23c   : > { %v422_v15 = vpop.trf.xlu1 }
 0x23d   : > { %771 = vst.msk [vmem:[%s1207_s30 + $0x8] sm:$0xff] %vm327_vm1, %v422_v15 }
 0x264   : > { %v515_v16 = vpop.permute.xlu1 %514 }
 0x265   : > { %517 = vxpose.xlu0.b32.start.end [1/1] (short) (narrow) %v515_v16, 8 }
 0x2d3   : > { %551 = vrot.lane.b32.xlu0 %v293_v7, %s1066_s5 }
 0x309   : > { %v533_v18 = vpop.trf.xlu0 }
 0x30a   : > { %774 = vst.msk [vmem:[%s1203_s28 + $0x18] sm:$0xff] %vm327_vm1, %v533_v18  ;;  %s957_s28 = scalar_lea.hbm %s1280_s3, 64 }
 0x30b   : > { %p959_p11 = scmp.lt.s32.totalorder %s957_s28, %s953_s25 }
 0x30d   : > { %p960_p12 = por %p959_p11, %p958_p10 }
 0x30f   : > { %p961_p13 = pnand %p960_p12, %p956_p9 }
 0x345   : > { %v552_v21 = vpop.permute.xlu0 %551 }
 0x346   : > { %554 = vxpose.xlu2.b32.start.end [1/1] (short) (narrow) %v552_v21, 8 }
 0x347   : > { %964 = shalt.err (!%p961_p13)
}
 0x348   : > { %s1067_s5 = smov 128   ;;  %s1068_s23 = smov 8  }
 0x349   : > { %792 = dma.vmem_to_hbm [thread:$0]  (%p1165_p4), %s608_s10, 512, %s610_s9, %s589_s22, %s1067_s5, %s1067_s5, %s1068_s23  }
 0x34a   : > { %s624_s27 = scalar_lea.hbm %s1281_s4, %s784_s24  ;;  %s625_s21 = sshll.u32 %s1207_s30, 4  ;;  %s626_s21 = int_to_ptr.vmem [resolvable:$true] %s625_s21 }
 0x34b   : > { %s627_s18 = sshll.u32 %s624_s27, 4  ;;  %s594_s14 = scalar_lea.sflag [#allocation9], %s1187_s7  ;;  %s628_s18 = int_to_ptr.hbm [resolvable:$true] %s627_s18 }
 0x34c   : > { %s979_s25 = sshra.s32 %s628_s18, 4  ;;  %s985_s22 = scalar_lea.hbm %s1281_s4, 64  ;;  %s980_s25 = int_to_ptr.hbm [resolvable:$true] %s979_s25 }
 0x34d   : > { %s981_s28 = scalar_lea.hbm %s980_s25, 32  ;;  %p986_p8 = scmp.lt.s32.totalorder %s980_s25, %s1281_s4 }
 0x34e   : > { %p982_p0 = scmp.ne.s32.totalorder %s980_s25, %s981_s28  ;;  %p987_p1 = scmp.lt.s32.totalorder %s985_s22, %s981_s28 }
 0x350   : > { %p983_p2 = pnand %p982_p0, %p1165_p4  ;;  %p988_p3 = por %p987_p1, %p986_p8 }
 0x352   : > { %p984_p5 = pneg %p983_p2 }
 0x354   : > { %p989_p9 = pnand %p988_p3, %p984_p5 }
 0x3df   : > { %v570_v22 = vpop.trf.xlu2 }
 0x3e0   : > { %775 = vst.msk [vmem:[%s1207_s30 + $0x18] sm:$0xff] %vm327_vm1, %v570_v22 }
 0x3e1   : > { %992 = shalt.err (!%p989_p9)
}
 0x3e2   : > { %793 = dma.vmem_to_hbm [thread:$0]  (%p1165_p4), %s626_s21, 512, %s628_s18, %s594_s14, %s1067_s5, %s1067_s5, %s1068_s23  }
 0x3e3 PF: > { %s642_s7 = sand.u32 1, %s1035_s15   ;;  %p805_p10 = pnand %p761_p6, %p1173_p7 }
 0x3e4   : > { %s643_s30 = scalar_lea.sflag [#allocation4], %s642_s7 }
 0x3e5   : > { %p806_p11 = pneg %p805_p10 }
 0x3e7   : > { %1026 = dma.done.wait (%p806_p11), %s643_s30, 512  }
 0x3e8   : > { %1028 = vsyncadd (%p806_p11), %s643_s30, 4294966784  ;;  %s653_s26 = scalar_lea.sflag [#allocation9], %s642_s7 }
 0x3e9   : > { %1030 = dma.done.wait (%p806_p11), %s653_s26, 512  }
 0x3ea   : > { %1032 = vsyncadd (%p806_p11), %s653_s26, 4294966784  ;;  %s25_s20 = sadd.s32 1, %s1055_s20   ;;  %s1288_s15 = smov %s1039_s16 }
 0x3eb   : > { %p22_p12 = scmp.ge.s32.totalorder %s25_s20, 4   ;;  %s1289_s16 = smov %s1043_s17 }
 0x3ec   : > { %s1290_s17 = smov %s1171_s12  ;;  %s1291_s18 = smov %s1051_s19 }
 0x3ed   : > { %s1292_s19 = smov %s1294_s6  ;;  %24 = sbr.rel (!%p22_p12) target bundleno = 9 (0x9), region = 104 }
 0x3f2   :  { %659 = vsyncpa [#allocation3], 1 }
 0x3f3   :  { %661 = vsyncpa [#allocation3 + $0x1], 1 }
 0x3f4   :  { %662 = vsyncpa [#allocation6], 1 }
 0x3f5   :  { %663 = vsyncpa [#allocation4], 1 }
 0x3f6   :  { %665 = vsyncpa [#allocation4 + $0x1], 1 }
 0x3f7   :  { %666 = vsyncpa [#allocation9], 1 }
 0x3f8   :  { %668 = vsyncpa [#allocation9 + $0x1], 1 }

</bundles_post_ra>
